<compile_context>
chip_gen: v6e
topology: v6e:2x2x1
jax: 0.10.0
libtpu: 0.0.40
codegen_flags: <defaults>
</compile_context>

<pallas_src>
import functools

import jax
import jax.numpy as jnp
from jax.experimental import pallas as pl
from jax.experimental.pallas import tpu as pltpu

KERNEL_SIZE = 10  # AvgPool2d(kernel_size=10, stride=1)


def _avgpool_kernel(x_ref, o_ref, col_ref, *, k):
    # x_ref:   (CB, H, W)        channel planes; W on lanes, H on sublanes
    # o_ref:   (CB, H_out, W_out)
    # col_ref: (CB, H_out, W) f32 scratch holding the H-direction window sums
    H_out = o_ref.shape[1]
    W_out = o_ref.shape[2]

    # ---- H-direction (sublane axis) sliding sum ----------------------------
    # k shifted slab reads from VMEM at sublane offsets, accumulated in f32 and
    # staged in the scratch so the second stage only touches H_out rows.
    col = x_ref[:, pl.ds(0, H_out), :].astype(jnp.float32)
    for j in range(1, k):
        col = col + x_ref[:, pl.ds(j, H_out), :].astype(jnp.float32)
    col_ref[...] = col

    # ---- W-direction (lane axis) sliding sum on the smaller scratch --------
    acc = col_ref[:, :, pl.ds(0, W_out)]
    for j in range(1, k):
        acc = acc + col_ref[:, :, pl.ds(j, W_out)]

    o_ref[...] = (acc * (1.0 / (k * k))).astype(o_ref.dtype)


def _vmem_budget_and_limit():
    """Per-generation VMEM budget / limit (bytes) derived at trace time."""
    cap = 64 << 20  # conservative default (v7x-sized) if query unavailable
    try:
        info = pltpu.get_tpu_info()
        cap = int(getattr(info, "vmem_capacity_bytes", cap))
    except Exception:
        pass
    budget = (cap * 3) // 4   # 96 MiB on 128 MiB parts, 48 MiB on v7x
    limit = (cap * 7) // 8    # 112 MiB on 128 MiB parts, 56 MiB on v7x
    return budget, limit


def _choose_c_block(N, C, H, W, H_out, W_out, dtype):
    """Channels per grid step: VMEM-safe, and >=~8 grid steps when possible."""
    budget, limit = _vmem_budget_and_limit()
    itemsize = jnp.dtype(dtype).itemsize
    sub = max(8, 32 // itemsize)  # sublane multiple: 8 f32, 16 bf16, 32 int8

    def rup(a, m):
        return ((a + m - 1) // m) * m

    # Tile-padding-aware per-channel VMEM footprint.
    in_plane = rup(H, sub) * rup(W, 128) * itemsize
    out_plane = rup(H_out, sub) * rup(W_out, 128) * itemsize
    scr_plane = rup(H_out, 8) * rup(W, 128) * 4  # f32 scratch, single copy
    per_channel = 2 * in_plane + 2 * out_plane + scr_plane  # dbl-buffered I/O

    max_cb = min(C, max(1, budget // per_channel))

    # Prefer >= ~8 total grid steps so both v7x TensorCores get pipelined work.
    target_steps = 8
    blocks_needed = min(C, max(1, -(-target_steps // N)))   # ceil(8/N), <= C
    cb_for_steps = max(1, -(-C // blocks_needed))            # ceil(C/blocks)

    c_blk = max(1, min(max_cb, cb_for_steps))
    return c_blk, limit


def transformer_block(x, *, kernel_size=KERNEL_SIZE):
    """AvgPool2d(kernel_size, stride=1) on an NCHW tensor via Pallas."""
    N, C, H, W = x.shape
    k = kernel_size
    H_out = H - k + 1
    W_out = W - k + 1
    assert H_out > 0 and W_out > 0, "spatial dims must be >= kernel_size"

    c_blk, vmem_limit = _choose_c_block(N, C, H, W, H_out, W_out, x.dtype)
    grid = (N, pl.cdiv(C, c_blk))

    return pl.pallas_call(
        functools.partial(_avgpool_kernel, k=k),
        out_shape=jax.ShapeDtypeStruct((N, C, H_out, W_out), x.dtype),
        grid=grid,
        in_specs=[
            pl.BlockSpec((None, c_blk, H, W), lambda n, c: (n, c, 0, 0)),
        ],
        out_specs=pl.BlockSpec(
            (None, c_blk, H_out, W_out), lambda n, c: (n, c, 0, 0)),
        scratch_shapes=[pltpu.VMEM((c_blk, H_out, W), jnp.float32)],
        compiler_params=pltpu.CompilerParams(
            dimension_semantics=("parallel", "parallel"),
            vmem_limit_bytes=int(vmem_limit)),
    )(x)


def _reference_avgpool(x, kernel_size=KERNEL_SIZE):
    # Pure-JAX reference (reduce_window mean) for the correctness check.
    summed = jax.lax.reduce_window(
        x, 0.0, jax.lax.add,
        window_dimensions=(1, 1, kernel_size, kernel_size),
        window_strides=(1, 1, 1, 1),
        padding="VALID")
    return summed / float(kernel_size * kernel_size)


if __name__ == "__main__":
    key = jax.random.PRNGKey(0)
    # spatial=16 so that 16 - 10 + 1 = 7 output positions per axis.
    x = jax.random.normal(key, (2, 4, 16, 16), dtype=jnp.float32)

    out = jax.block_until_ready(transformer_block(x))

    ref = _reference_avgpool(x)
    assert out.shape == (2, 4, 7, 7), out.shape
    assert jnp.allclose(out, ref, atol=1e-5, rtol=1e-5), "mismatch vs reference"

    print("KERNEL_OK")
</pallas_src>

<mosaic_0001>
module attributes {stable_mosaic.version = 11 : i64} {
  func.func @_avgpool_kernel(%arg0: i32, %arg1: i32, %arg2: memref<1x1x16x16xf32, #tpu.memory_space<vmem>>, %arg3: memref<1x1x7x7xf32, #tpu.memory_space<vmem>>, %arg4: memref<1x7x16xf32, #tpu.memory_space<vmem>>) attributes {dimension_semantics = [#tpu.dimension_semantics<parallel>, #tpu.dimension_semantics<parallel>], iteration_bounds = array<i64: 2, 4>, scalar_prefetch = 0 : i64, scratch_operands = 1 : i64, tpu.core_type = #tpu.core_type<tc>, window_params = [{transform_indices = @transform_0, window_bounds = array<i64: 1, 1, 16, 16>}, {transform_indices = @transform_1, window_bounds = array<i64: 1, 1, 7, 7>}]} {
    %c0 = arith.constant 0 : index
    %c0_0 = arith.constant 0 : index
    %c0_1 = arith.constant 0 : index
    %c0_2 = arith.constant 0 : index
    %0 = vector.load %arg2[%c0, %c0_0, %c0_1, %c0_2] : memref<1x1x16x16xf32, #tpu.memory_space<vmem>>, vector<1x1x7x16xf32>
    %1 = vector.shape_cast %0 : vector<1x1x7x16xf32> to vector<1x7x16xf32>
    %c0_3 = arith.constant 0 : index
    %c0_4 = arith.constant 0 : index
    %c1 = arith.constant 1 : index
    %c0_5 = arith.constant 0 : index
    %2 = vector.load %arg2[%c0_3, %c0_4, %c1, %c0_5] : memref<1x1x16x16xf32, #tpu.memory_space<vmem>>, vector<1x1x7x16xf32>
    %3 = vector.shape_cast %2 : vector<1x1x7x16xf32> to vector<1x7x16xf32>
    %4 = arith.addf %1, %3 : vector<1x7x16xf32>
    %c0_6 = arith.constant 0 : index
    %c0_7 = arith.constant 0 : index
    %c2 = arith.constant 2 : index
    %c0_8 = arith.constant 0 : index
    %5 = vector.load %arg2[%c0_6, %c0_7, %c2, %c0_8] : memref<1x1x16x16xf32, #tpu.memory_space<vmem>>, vector<1x1x7x16xf32>
    %6 = vector.shape_cast %5 : vector<1x1x7x16xf32> to vector<1x7x16xf32>
    %7 = arith.addf %4, %6 : vector<1x7x16xf32>
    %c0_9 = arith.constant 0 : index
    %c0_10 = arith.constant 0 : index
    %c3 = arith.constant 3 : index
    %c0_11 = arith.constant 0 : index
    %8 = vector.load %arg2[%c0_9, %c0_10, %c3, %c0_11] : memref<1x1x16x16xf32, #tpu.memory_space<vmem>>, vector<1x1x7x16xf32>
    %9 = vector.shape_cast %8 : vector<1x1x7x16xf32> to vector<1x7x16xf32>
    %10 = arith.addf %7, %9 : vector<1x7x16xf32>
    %c0_12 = arith.constant 0 : index
    %c0_13 = arith.constant 0 : index
    %c4 = arith.constant 4 : index
    %c0_14 = arith.constant 0 : index
    %11 = vector.load %arg2[%c0_12, %c0_13, %c4, %c0_14] : memref<1x1x16x16xf32, #tpu.memory_space<vmem>>, vector<1x1x7x16xf32>
    %12 = vector.shape_cast %11 : vector<1x1x7x16xf32> to vector<1x7x16xf32>
    %13 = arith.addf %10, %12 : vector<1x7x16xf32>
    %c0_15 = arith.constant 0 : index
    %c0_16 = arith.constant 0 : index
    %c5 = arith.constant 5 : index
    %c0_17 = arith.constant 0 : index
    %14 = vector.load %arg2[%c0_15, %c0_16, %c5, %c0_17] : memref<1x1x16x16xf32, #tpu.memory_space<vmem>>, vector<1x1x7x16xf32>
    %15 = vector.shape_cast %14 : vector<1x1x7x16xf32> to vector<1x7x16xf32>
    %16 = arith.addf %13, %15 : vector<1x7x16xf32>
    %c0_18 = arith.constant 0 : index
    %c0_19 = arith.constant 0 : index
    %c6 = arith.constant 6 : index
    %c0_20 = arith.constant 0 : index
    %17 = vector.load %arg2[%c0_18, %c0_19, %c6, %c0_20] : memref<1x1x16x16xf32, #tpu.memory_space<vmem>>, vector<1x1x7x16xf32>
    %18 = vector.shape_cast %17 : vector<1x1x7x16xf32> to vector<1x7x16xf32>
    %19 = arith.addf %16, %18 : vector<1x7x16xf32>
    %c0_21 = arith.constant 0 : index
    %c0_22 = arith.constant 0 : index
    %c7 = arith.constant 7 : index
    %c0_23 = arith.constant 0 : index
    %20 = vector.load %arg2[%c0_21, %c0_22, %c7, %c0_23] : memref<1x1x16x16xf32, #tpu.memory_space<vmem>>, vector<1x1x7x16xf32>
    %21 = vector.shape_cast %20 : vector<1x1x7x16xf32> to vector<1x7x16xf32>
    %22 = arith.addf %19, %21 : vector<1x7x16xf32>
    %c0_24 = arith.constant 0 : index
    %c0_25 = arith.constant 0 : index
    %c8 = arith.constant 8 : index
    %c0_26 = arith.constant 0 : index
    %23 = vector.load %arg2[%c0_24, %c0_25, %c8, %c0_26] : memref<1x1x16x16xf32, #tpu.memory_space<vmem>>, vector<1x1x7x16xf32>
    %24 = vector.shape_cast %23 : vector<1x1x7x16xf32> to vector<1x7x16xf32>
    %25 = arith.addf %22, %24 : vector<1x7x16xf32>
    %c0_27 = arith.constant 0 : index
    %c0_28 = arith.constant 0 : index
    %c9 = arith.constant 9 : index
    %c0_29 = arith.constant 0 : index
    %26 = vector.load %arg2[%c0_27, %c0_28, %c9, %c0_29] : memref<1x1x16x16xf32, #tpu.memory_space<vmem>>, vector<1x1x7x16xf32>
    %27 = vector.shape_cast %26 : vector<1x1x7x16xf32> to vector<1x7x16xf32>
    %28 = arith.addf %25, %27 : vector<1x7x16xf32>
    %c0_30 = arith.constant 0 : index
    %c0_31 = arith.constant 0 : index
    %c0_32 = arith.constant 0 : index
    %29 = vector.load %arg4[%c0_30, %c0_31, %c0_32] : memref<1x7x16xf32, #tpu.memory_space<vmem>>, vector<1x7x16xf32>
    tpu.vector_store %arg4[%c0_30, %c0_31, %c0_32], %28 {strides = array<i32>} : memref<1x7x16xf32, #tpu.memory_space<vmem>>, vector<1x7x16xf32>,
    %c0_33 = arith.constant 0 : index
    %c0_34 = arith.constant 0 : index
    %c0_35 = arith.constant 0 : index
    %30 = vector.load %arg4[%c0_33, %c0_34, %c0_35] : memref<1x7x16xf32, #tpu.memory_space<vmem>>, vector<1x7x7xf32>
    %c0_36 = arith.constant 0 : index
    %c0_37 = arith.constant 0 : index
    %c1_38 = arith.constant 1 : index
    %31 = vector.load %arg4[%c0_36, %c0_37, %c1_38] : memref<1x7x16xf32, #tpu.memory_space<vmem>>, vector<1x7x7xf32>
    %32 = arith.addf %30, %31 : vector<1x7x7xf32>
    %c0_39 = arith.constant 0 : index
    %c0_40 = arith.constant 0 : index
    %c2_41 = arith.constant 2 : index
    %33 = vector.load %arg4[%c0_39, %c0_40, %c2_41] : memref<1x7x16xf32, #tpu.memory_space<vmem>>, vector<1x7x7xf32>
    %34 = arith.addf %32, %33 : vector<1x7x7xf32>
    %c0_42 = arith.constant 0 : index
    %c0_43 = arith.constant 0 : index
    %c3_44 = arith.constant 3 : index
    %35 = vector.load %arg4[%c0_42, %c0_43, %c3_44] : memref<1x7x16xf32, #tpu.memory_space<vmem>>, vector<1x7x7xf32>
    %36 = arith.addf %34, %35 : vector<1x7x7xf32>
    %c0_45 = arith.constant 0 : index
    %c0_46 = arith.constant 0 : index
    %c4_47 = arith.constant 4 : index
    %37 = vector.load %arg4[%c0_45, %c0_46, %c4_47] : memref<1x7x16xf32, #tpu.memory_space<vmem>>, vector<1x7x7xf32>
    %38 = arith.addf %36, %37 : vector<1x7x7xf32>
    %c0_48 = arith.constant 0 : index
    %c0_49 = arith.constant 0 : index
    %c5_50 = arith.constant 5 : index
    %39 = vector.load %arg4[%c0_48, %c0_49, %c5_50] : memref<1x7x16xf32, #tpu.memory_space<vmem>>, vector<1x7x7xf32>
    %40 = arith.addf %38, %39 : vector<1x7x7xf32>
    %c0_51 = arith.constant 0 : index
    %c0_52 = arith.constant 0 : index
    %c6_53 = arith.constant 6 : index
    %41 = vector.load %arg4[%c0_51, %c0_52, %c6_53] : memref<1x7x16xf32, #tpu.memory_space<vmem>>, vector<1x7x7xf32>
    %42 = arith.addf %40, %41 : vector<1x7x7xf32>
    %c0_54 = arith.constant 0 : index
    %c0_55 = arith.constant 0 : index
    %c7_56 = arith.constant 7 : index
    %43 = vector.load %arg4[%c0_54, %c0_55, %c7_56] : memref<1x7x16xf32, #tpu.memory_space<vmem>>, vector<1x7x7xf32>
    %44 = arith.addf %42, %43 : vector<1x7x7xf32>
    %c0_57 = arith.constant 0 : index
    %c0_58 = arith.constant 0 : index
    %c8_59 = arith.constant 8 : index
    %45 = vector.load %arg4[%c0_57, %c0_58, %c8_59] : memref<1x7x16xf32, #tpu.memory_space<vmem>>, vector<1x7x7xf32>
    %46 = arith.addf %44, %45 : vector<1x7x7xf32>
    %c0_60 = arith.constant 0 : index
    %c0_61 = arith.constant 0 : index
    %c9_62 = arith.constant 9 : index
    %47 = vector.load %arg4[%c0_60, %c0_61, %c9_62] : memref<1x7x16xf32, #tpu.memory_space<vmem>>, vector<1x7x7xf32>
    %48 = arith.addf %46, %47 : vector<1x7x7xf32>
    %cst = arith.constant 0.00999999977 : f32
    %49 = vector.broadcast %cst : f32 to vector<1x7x7xf32>
    %50 = arith.mulf %48, %49 : vector<1x7x7xf32>
    %c0_63 = arith.constant 0 : index
    %c0_64 = arith.constant 0 : index
    %c0_65 = arith.constant 0 : index
    %c0_66 = arith.constant 0 : index
    %51 = vector.load %arg3[%c0_63, %c0_64, %c0_65, %c0_66] : memref<1x1x7x7xf32, #tpu.memory_space<vmem>>, vector<1x1x7x7xf32>
    %52 = vector.shape_cast %51 : vector<1x1x7x7xf32> to vector<1x7x7xf32>
    %53 = vector.shape_cast %50 : vector<1x7x7xf32> to vector<1x1x7x7xf32>
    tpu.vector_store %arg3[%c0_63, %c0_64, %c0_65, %c0_66], %53 {strides = array<i32>} : memref<1x1x7x7xf32, #tpu.memory_space<vmem>>, vector<1x1x7x7xf32>,
    return
  }
  func.func @transform_0(%arg0: i32, %arg1: i32) -> (i32, i32, i32, i32) {
    %c0_i32 = arith.constant 0 : i32
    %c0_i32_0 = arith.constant 0 : i32
    %c0_i32_1 = arith.constant 0 : i32
    return %arg0, %arg1, %c0_i32, %c0_i32_0 : i32, i32, i32, i32
  }
  func.func @transform_1(%arg0: i32, %arg1: i32) -> (i32, i32, i32, i32) {
    %c0_i32 = arith.constant 0 : i32
    %c0_i32_0 = arith.constant 0 : i32
    %c0_i32_1 = arith.constant 0 : i32
    return %arg0, %arg1, %c0_i32, %c0_i32_0 : i32, i32, i32, i32
  }
}

</mosaic_0001>

<bundles_post_ra>
// kernel: tpu_custom_call.1
= control target key start
LH: loop header
LB: loop body
LE: loop exit
PB: predicated region body
PF: predicated region fallthrough
CT: control target
= control target key end

     0   :  { %6 = vsyncpa [#allocation4], 0  ;;  %s657_s0 = inlined_call_operand.hbm [shape: f32[2,4,16,16], index: 0, kind: input, shape index: {}]   ;;  %s658_s1 = inlined_call_operand.vmem [shape: f32[2,4,7,7], index: 1, kind: output, shape index: {}]  }
   0x1   :  { %8 = vsyncpa [#allocation4 + $0x1], 0  ;;  %s532_s6 = smov 0   ;;  %s534_s7 = smov 0  }
   0x2   :  { %s536_s8 = smov 0   ;;  %s538_s9 = smov 0  }
   0x3   :  { %s540_s10 = smov 0   ;;  %s542_s11 = smov 0  }
   0x4   :  { %s544_s12 = smov 0   ;;  %s546_s13 = smov 0  }
   0x5 LB: > { %s318_s14 = sadd.s32 4294967295, %s508_s13   ;;  %s23_s15 = sadd.s32 1, %s500_s11  ;;  %s508_s13 = sphi %s546_s13, %s14_s13   ;;  %s504_s12 = sphi %s544_s12, %s668_s12   ;;  %s500_s11 = sphi %s542_s11, %s667_s11   ;;  %s496_s10 = sphi %s540_s10, %s666_s10   ;;  %s492_s9 = sphi %s538_s9, %s665_s9   ;;  %s488_s8 = sphi %s536_s8, %s664_s8   ;;  %s484_s7 = sphi %s534_s7, %s663_s7   ;;  %s480_s6 = sphi %s532_s6, %s662_s6  }
   0x6   : > { %p24_p0 = scmp.ge.s32.totalorder %s23_s15, 4  ;;  %s26_s16 = sadd.s32 1, %s504_s12 }
   0x7   : > { %s35_s17 = sadd.s32 1, %s488_s8  ;;  %p42_p1 = scmp.ne.s32.totalorder %s488_s8, %s484_s7 }
   0x8   : > { %s670_s15 = smov (%p24_p0, %s23_s15), 0  ;;  %s672_s16 = smov (!%p24_p0, %s26_s16), %s504_s12 }
   0x9   : > { %s31_s18 = ssub.s32 %s500_s11, %s670_s15  ;;  %p43_p2 = scmp.eq.s32.totalorder %s508_s13, 0 }
   0xa   : > { %p28_p3 = scmp.ge.s32.totalorder %s672_s16, 2  ;;  %p48_p4 = scmp.ne.s32.totalorder %s484_s7, %s480_s6 }
   0xb   : > { %p583_p5 = por %p43_p2, %p42_p1  ;;  %p49_p6 = scmp.eq.s32.totalorder %s318_s14, 0 }
   0xc   : > { %s674_s16 = smov (%p28_p3, %s672_s16), 0  ;;  %p338_p8 = scmp.lt.s32.totalorder %s508_s13, 8 }
   0xd   : > { %p589_p7 = por %p49_p6, %p48_p4  ;;  %s30_s21 = ssub.s32 %s504_s12, %s674_s16 }
   0xe   : > { %s32_s22 = sor.u32 %s31_s18, %s30_s21  ;;  %s100_s23 = sand.u32 1, %s488_s8  }
   0xf   : > { %p33_p9 = scmp.eq.s32.totalorder %s32_s22, 0  ;;  %s322_s24 = sshll.u32 %s100_s23, 4 }
  0x10   : > { %s323_s25 = sshll.u32 %s500_s11, 1  ;;  %s324_s27 = sshll.u32 %s504_s12, 3 }
  0x11   : > { %s599_s26 = scalar_select %p33_p9, %s488_s8, %s35_s17  }
  0x12   : > { %s110_s28 = sadd.s32 %s324_s27, %s323_s25  ;;  %s104_s29 = scalar_lea.vmem [#allocation3], %s322_s24 }
  0x13   : > { %s113_s30 = sshll.u32 %s104_s29, 4  ;;  %s325_s2 = sshll.u32 %s110_s28, 7  ;;  %s114_s30 = int_to_ptr.vmem [resolvable:$true] %s113_s30 }
  0x14   : > { %s112_s5 = scalar_lea.hbm %s657_s0, %s325_s2  ;;  %p609_p10 = pnand %p338_p8, %p583_p5 }
  0x15   : > { %p326_p11 = scmp.ge.s32.totalorder %s508_s13, 1  ;;  %s101_s14 = scalar_lea.sflag [#allocation4], %s100_s23 }
  0x16   : > { %p416_p12 = pneg %p609_p10  ;;  %s427_s17 = scalar_lea.vmem %s114_s30, 256 }
  0x17   : > { %p428_p13 = scmp.ne.s32.totalorder %s114_s30, %s427_s17  ;;  %s510_s18 = smov [#allocation3]  }
  0x18   : > { %s432_s21 = sshll.u32 %s510_s18, 4  ;;  %s433_s21 = int_to_ptr.vmem [resolvable:$false] %s432_s21 }
  0x19   : > { %p430_p0 = pnand %p428_p13, %p416_p12  ;;  %s434_s22 = scalar_lea.vmem %s433_s21, 512 }
  0x1a   : > { %p435_p2 = scmp.lt.s32.totalorder %s114_s30, %s433_s21  ;;  %p436_p3 = scmp.lt.s32.totalorder %s434_s22, %s427_s17 }
  0x1b   : > { %p431_p1 = pneg %p430_p0 }
  0x1c   : > { %p437_p4 = por %p436_p3, %p435_p2 }
  0x1e   : > { %p438_p5 = pnand %p437_p4, %p431_p1 }
  0x20   : > { %441 = shalt.err (!%p438_p5)
}
  0x21   : > { %s511_s19 = smov 128   ;;  %s512_s23 = smov 8  }
  0x22   : > { %337 = dma.hbm_to_vmem [thread:$0]  (!%p609_p10), %s112_s5, 256, %s114_s30, %s101_s14, %s511_s19, %s511_s19, %s512_s23  }
  0x23   : > { %p121_p6 = scmp.lt.s32.totalorder %s508_s13, 9 }
  0x25   : > { %p122_p8 = pnand %p326_p11, %p121_p6 }
  0x26   : > { %s127_s24 = sand.u32 (!%p122_p8), 1, %s484_s7  }
  0x27   : > { %125 = sbr.rel (%p122_p8) target bundleno = 211 (0xd3), region = 24  ;;  %s327_s25 = sshll.u32 (!%p122_p8), %s127_s24, 4 }
  0x28   : > { %s128_s27 = scalar_lea.sflag (!%p122_p8), [#allocation4], %s127_s24  ;;  %s131_s28 = scalar_lea.vmem (!%p122_p8), [#allocation3], %s327_s25 }
  0x2c   : > { %475 = dma.done.wait (%p589_p7), %s128_s27, 256  }
  0x2d   : > { %477 = vsyncadd (%p589_p7), %s128_s27, 4294967040  ;;  %v161_v0 = vld [vmem:[%s131_s28] sm:$0x7f]  ;;  %v174_v12 = vld [vmem:[%s131_s28 + $0x7] sm:$0x7f]  ;;  %vm180_vm0 = vcmask 129024  }
  0x2e   : > { %v162_v1 = vld [vmem:[%s131_s28 + $0x1] sm:$0x7f]  ;;  %v176_v14 = vld [vmem:[%s131_s28 + $0x8] sm:$0x7f]  ;;  %s513_s20 = smov 127   ;;  %s514_s29 = smov 125  }
  0x2f   : > { %v164_v2 = vld [vmem:[%s131_s28 + $0x2] sm:$0x7f]  ;;  %v163_v3 = vadd.f32 %v162_v1, %v161_v0  ;;  %v178_v16 = vld [vmem:[%s131_s28 + $0x9] sm:$0x7f]  ;;  %s515_s30 = smov 126   ;;  %s516_s2 = smov 124  }
  0x30   : > { %v166_v4 = vld [vmem:[%s131_s28 + $0x3] sm:$0x7f]  ;;  %s517_s3 = smov 123   ;;  %s518_s4 = smov 122   ;;  %vm221_vm1 = vcmask 55296  }
  0x31   : > { %v165_v5 = vadd.f32 %v164_v2, %v163_v3  ;;  %v168_v6 = vld [vmem:[%s131_s28 + $0x4] sm:$0x7f]  ;;  %s519_s5 = smov 121   ;;  %s520_s6 = smov 120  }
  0x32   : > { %v170_v8 = vld [vmem:[%s131_s28 + $0x5] sm:$0x7f]  ;;  %s521_s14 = smov 119   ;;  %p153_p7 = scmp.lt.s32.totalorder %s496_s10, 1 }
  0x33   : > { %v167_v7 = vadd.f32 %v166_v4, %v165_v5  ;;  %v172_v10 = vld [vmem:[%s131_s28 + $0x6] sm:$0x7f]  ;;  %p155_p9 = scmp.lt.s32.totalorder %s492_s9, 3 }
  0x34   : > { %s676_s10 = smov (!%p153_p7, %s496_s10), 1 }
  0x35   : > { %v169_v9 = vadd.f32 %v168_v6, %v167_v7  ;;  %s678_s9 = smov (!%p155_p9, %s492_s9), 3  ;;  %s328_s17 = sshll.u32 %s676_s10, 2 }
  0x36   : > { %s158_s18 = sadd.s32 %s328_s17, %s678_s9 }
  0x37   : > { %v171_v11 = vadd.f32 %v170_v8, %v169_v9  ;;  %s329_s21 = sshll.u32 %s158_s18, 3 }
  0x38   : > { %s160_s23 = scalar_lea.vmem %s658_s1, %s329_s21 }
  0x39   : > { %v173_v13 = vadd.f32 %v172_v10, %v171_v11 }
  0x3b   : > { %v175_v15 = vadd.f32 %v174_v12, %v173_v13 }
  0x3d   : > { %v177_v17 = vadd.f32 %v176_v14, %v175_v15 }
  0x3f   : > { %v179_v18 = vadd.f32 %v178_v16, %v177_v17 }
  0x41   : > { %181 = vst.msk [vmem:[#allocation2] sm:$0x7f] %vm180_vm0, %v179_v18 }
  0x48   : > { %v182_v19 = vld [vmem:[#allocation2] sm:$0x7f] }
  0x49   : > { %184 = vrot.lane.b32.xlu0 %v182_v19, %s513_s20  ;;  %192 = vrot.lane.b32.xlu1 %v182_v19, %s514_s29 }
  0x4d   : > { %188 = vrot.lane.b32.xlu0 %v182_v19, %s515_s30  ;;  %196 = vrot.lane.b32.xlu1 %v182_v19, %s516_s2 }
  0x51   : > { %200 = vrot.lane.b32.xlu0 %v182_v19, %s517_s3  ;;  %204 = vrot.lane.b32.xlu1 %v182_v19, %s518_s4 }
  0x55   : > { %208 = vrot.lane.b32.xlu0 %v182_v19, %s519_s5  ;;  %212 = vrot.lane.b32.xlu1 %v182_v19, %s520_s6 }
  0x59   : > { %216 = vrot.lane.b32.xlu0 %v182_v19, %s521_s14 }
  0xbb   : > { %v185_v20 = vpop.permute.xlu0 %184  ;;  %v193_v21 = vpop.permute.xlu1 %192 }
  0xbc   : > { %v187_v22 = vadd.f32 %v185_v20, %v182_v19 }
  0xbf   : > { %v189_v23 = vpop.permute.xlu0 %188  ;;  %v197_v24 = vpop.permute.xlu1 %196 }
  0xc0   : > { %v191_v25 = vadd.f32 %v189_v23, %v187_v22 }
  0xc2   : > { %v195_v26 = vadd.f32 %v193_v21, %v191_v25 }
  0xc3   : > { %v201_v27 = vpop.permute.xlu0 %200  ;;  %v205_v28 = vpop.permute.xlu1 %204 }
  0xc4   : > { %v199_v29 = vadd.f32 %v197_v24, %v195_v26 }
  0xc6   : > { %v203_v30 = vadd.f32 %v201_v27, %v199_v29 }
  0xc7   : > { %v209_v31 = vpop.permute.xlu0 %208  ;;  %v213_v33 = vpop.permute.xlu1 %212 }
  0xc8   : > { %v207_v32 = vadd.f32 %v205_v28, %v203_v30 }
  0xca   : > { %v211_v34 = vadd.f32 %v209_v31, %v207_v32 }
  0xcb   : > { %v217_v35 = vpop.permute.xlu0 %216 }
  0xcc   : > { %v215_v36 = vadd.f32 %v213_v33, %v211_v34 }
  0xce   : > { %v219_v37 = vadd.f32 %v217_v35, %v215_v36 }
  0xd0   : > { %v220_v38 = vmul.f32 0.01, %v219_v37 }
  0xd2   : > { %222 = vst.msk [vmem:[%s160_s23] sm:$0x7f] %vm221_vm1, %v220_v38 }
  0xd3 PF: > { %s14_s13 = sadd.s32 1, %s508_s13   ;;  %s662_s6 = smov %s484_s7 }
  0xd4   : > { %p11_p10 = scmp.ge.s32.totalorder %s14_s13, 10   ;;  %s663_s7 = smov %s488_s8 }
  0xd5   : > { %s664_s8 = smov %s599_s26  ;;  %s665_s9 = smov %s500_s11 }
  0xd6   : > { %s666_s10 = smov %s504_s12  ;;  %s667_s11 = smov %s670_s15 }
  0xd7   : > { %s668_s12 = smov %s674_s16  ;;  %13 = sbr.rel (!%p11_p10) target bundleno = 5 (0x5), region = 64 }
  0xdc   :  { %250 = vsyncpa [#allocation4], 1 }
  0xdd   :  { %252 = vsyncpa [#allocation4 + $0x1], 1 }

</bundles_post_ra>
